<compile_context>
chip_gen: v7x
topology: tpu7x:2x2x1
jax: 0.10.0
libtpu: 0.0.40
codegen_flags: <defaults>
</compile_context>

<pallas_src>
import jax
import jax.numpy as jnp
from jax.experimental import pallas as pl
from jax.experimental.pallas import tpu as pltpu


def decoder_layer_kernel(x_ref, bias_ref, g1_ref, be1_ref,
                         wqkv_ref, wo_ref, bo_ref,
                         g2_ref, be2_ref,
                         w1_ref, bf1_ref, w2_ref, bf2_ref,
                         o_ref):
    x = x_ref[...]                       # (B*T, C) float32
    BT, C = x.shape
    HC = wo_ref.shape[0]                 # H * C
    H = HC // C
    eps = 1e-5                           # torch LayerNorm default

    def layer_norm(v, gamma, beta):
        mu = jnp.mean(v, axis=-1, keepdims=True)
        var = jnp.mean((v - mu) ** 2, axis=-1, keepdims=True)   # biased, like torch
        return (v - mu) * jax.lax.rsqrt(var + eps) * gamma + beta

    # ---- norm_1 ----
    xn = layer_norm(x, g1_ref[...], be1_ref[...])

    # ---- fused QKV projection for all heads: one wide MXU matmul ----
    # (softmax scale is pre-folded into the Q part of wqkv in the wrapper)
    qkv = jnp.dot(xn.astype(jnp.bfloat16), wqkv_ref[...],
                  preferred_element_type=jnp.float32)           # (BT, 3*H*C)

    bias = bias_ref[...]                 # (BT, BT) additive mask: 0 / -1e30

    # ---- per-head attention, output projection accumulated (no concat) ----
    attn = jnp.zeros((BT, C), jnp.float32)
    for h in range(H):                   # H is small & static -> unrolled
        q = qkv[:, h * C:(h + 1) * C].astype(jnp.bfloat16)
        k = qkv[:, HC + h * C:HC + (h + 1) * C].astype(jnp.bfloat16)
        v = qkv[:, 2 * HC + h * C:2 * HC + (h + 1) * C].astype(jnp.bfloat16)

        s = jax.lax.dot_general(q, k, (((1,), (1,)), ((), ())),
                                preferred_element_type=jnp.float32) + bias
        s = s - jnp.max(s, axis=-1, keepdims=True)
        p = jnp.exp(s)
        p = p * pl.reciprocal(jnp.sum(p, axis=-1, keepdims=True), approx=True)

        pv = jnp.dot(p.astype(jnp.bfloat16), v,
                     preferred_element_type=jnp.float32)        # (BT, C)
        attn = attn + jnp.dot(pv.astype(jnp.bfloat16),
                              wo_ref[h * C:(h + 1) * C, :],
                              preferred_element_type=jnp.float32)

    attn = attn + bo_ref[...] + x        # output-proj bias + residual 1

    # ---- norm_2 + feed forward ----
    an = layer_norm(attn, g2_ref[...], be2_ref[...])
    h1 = jnp.dot(an.astype(jnp.bfloat16), w1_ref[...],
                 preferred_element_type=jnp.float32) + bf1_ref[...]
    h1 = jnp.maximum(h1, 0.0)            # ReLU
    ff = jnp.dot(h1.astype(jnp.bfloat16), w2_ref[...],
                 preferred_element_type=jnp.float32) + bf2_ref[...]

    o_ref[...] = ff + attn               # residual 2


def decoder_layer(x, params):
    B, T, C = x.shape
    (g1, be1, wq, wk, wv, wo, bo, g2, be2, w1, bf1, w2, bf2) = params
    H = wq.shape[0]
    BT = B * T

    # Flatten batch*seq into one slab; the whole layer is one grid step.
    x2d = x.reshape(BT, C)

    # Block-diagonal causal ADDITIVE mask, built once outside the kernel
    # (equivalent to the per-sequence tril buffer registered by the module).
    row = jnp.arange(BT, dtype=jnp.int32)[:, None]
    col = jnp.arange(BT, dtype=jnp.int32)[None, :]
    keep = (row >= col) & ((row // T) == (col // T))
    bias = jnp.where(keep, 0.0, -1e30).astype(jnp.float32)

    # Pack per-head Q/K/V weights into one (C, 3*H*C) matrix (bf16 for MXU).
    # Fold the attention scale C**-0.5 into the Q weights.
    scale = jnp.float32(C) ** (-0.5)
    wq_flat = jnp.transpose(wq, (1, 0, 2)).reshape(C, H * C) * scale
    wk_flat = jnp.transpose(wk, (1, 0, 2)).reshape(C, H * C)
    wv_flat = jnp.transpose(wv, (1, 0, 2)).reshape(C, H * C)
    wqkv = jnp.concatenate([wq_flat, wk_flat, wv_flat], axis=1).astype(jnp.bfloat16)

    wo_bf = wo.astype(jnp.bfloat16)
    w1_bf = w1.astype(jnp.bfloat16)
    w2_bf = w2.astype(jnp.bfloat16)

    inputs = (x2d, bias, g1, be1, wqkv, wo_bf, bo, g2, be2, w1_bf, bf1, w2_bf, bf2)

    def full_spec(a):
        nd = a.ndim
        return pl.BlockSpec(a.shape, lambda i, _nd=nd: (0,) * _nd)

    out2d = pl.pallas_call(
        decoder_layer_kernel,
        out_shape=jax.ShapeDtypeStruct((BT, C), jnp.float32),
        grid_spec=pltpu.PrefetchScalarGridSpec(
            num_scalar_prefetch=0,
            grid=(1,),
            in_specs=[full_spec(a) for a in inputs],
            out_specs=pl.BlockSpec((BT, C), lambda i: (0, 0)),
        ),
        compiler_params=pltpu.CompilerParams(
            dimension_semantics=("arbitrary",)),
    )(*inputs)

    return out2d.reshape(B, T, C)


def decoder_layer_ref(x, params):
    """Pure-JAX f32 reference mirroring the PyTorch forward."""
    (g1, be1, wq, wk, wv, wo, bo, g2, be2, w1, bf1, w2, bf2) = params
    B, T, C = x.shape
    H = wq.shape[0]
    eps = 1e-5

    def ln(v, g, b):
        mu = jnp.mean(v, axis=-1, keepdims=True)
        var = jnp.mean((v - mu) ** 2, axis=-1, keepdims=True)
        return (v - mu) / jnp.sqrt(var + eps) * g + b

    xn = ln(x, g1[0], be1[0])
    mask = jnp.tril(jnp.ones((T, T), jnp.float32))
    outs = []
    for h in range(H):
        q = xn @ wq[h]
        k = xn @ wk[h]
        v = xn @ wv[h]
        s = (q @ jnp.swapaxes(k, -1, -2)) * C ** (-0.5)
        s = jnp.where(mask == 0, -jnp.inf, s)
        p = jax.nn.softmax(s, axis=-1)
        outs.append(p @ v)
    cat = jnp.concatenate(outs, axis=-1)
    attn = cat @ wo + bo[0]
    attn = attn + x
    an = ln(attn, g2[0], be2[0])
    ff = jnp.maximum(an @ w1 + bf1[0], 0.0) @ w2 + bf2[0]
    return ff + attn


if __name__ == "__main__":
    # Small, decoder-consistent shapes.
    B, T, C, H, FF = 2, 8, 32, 2, 64          # context_size = T

    key = jax.random.PRNGKey(0)
    ks = jax.random.split(key, 12)
    s = 0.05

    x = jax.random.normal(ks[0], (B, T, C), jnp.float32)

    # LayerNorm params (torch init: weight=1, bias=0)
    g1, be1 = jnp.ones((1, C), jnp.float32), jnp.zeros((1, C), jnp.float32)
    g2, be2 = jnp.ones((1, C), jnp.float32), jnp.zeros((1, C), jnp.float32)

    # Per-head Q/K/V (no bias), stored transposed: y = x @ W
    wq = s * jax.random.normal(ks[1], (H, C, C), jnp.float32)
    wk = s * jax.random.normal(ks[2], (H, C, C), jnp.float32)
    wv = s * jax.random.normal(ks[3], (H, C, C), jnp.float32)

    # Multi-head output projection: (H*C -> C) with bias
    wo = s * jax.random.normal(ks[4], (H * C, C), jnp.float32)
    bo = s * jax.random.normal(ks[5], (1, C), jnp.float32)

    # FeedForward: C -> FF -> C with biases
    w1 = s * jax.random.normal(ks[6], (C, FF), jnp.float32)
    bf1 = s * jax.random.normal(ks[7], (1, FF), jnp.float32)
    w2 = s * jax.random.normal(ks[8], (FF, C), jnp.float32)
    bf2 = s * jax.random.normal(ks[9], (1, C), jnp.float32)

    params = (g1, be1, wq, wk, wv, wo, bo, g2, be2, w1, bf1, w2, bf2)

    out = decoder_layer(x, params)
    out = jax.block_until_ready(out)

    ref = decoder_layer_ref(x, params)
    assert out.shape == (B, T, C) and out.dtype == jnp.float32
    # bf16 MXU operands -> loosened tolerance vs the f32 reference.
    assert jnp.allclose(out, ref, rtol=2e-2, atol=2e-2), \
        f"max abs err {jnp.max(jnp.abs(out - ref))}"

    print("KERNEL_OK")
</pallas_src>

<mosaic_0001>
module attributes {stable_mosaic.version = 11 : i64} {
  func.func @decoder_layer_kernel(%arg0: i32, %arg1: memref<16x32xf32, #tpu.memory_space<vmem>>, %arg2: memref<16x16xf32, #tpu.memory_space<vmem>>, %arg3: memref<1x32xf32, #tpu.memory_space<vmem>>, %arg4: memref<1x32xf32, #tpu.memory_space<vmem>>, %arg5: memref<32x192xbf16, #tpu.memory_space<vmem>>, %arg6: memref<64x32xbf16, #tpu.memory_space<vmem>>, %arg7: memref<1x32xf32, #tpu.memory_space<vmem>>, %arg8: memref<1x32xf32, #tpu.memory_space<vmem>>, %arg9: memref<1x32xf32, #tpu.memory_space<vmem>>, %arg10: memref<32x64xbf16, #tpu.memory_space<vmem>>, %arg11: memref<1x64xf32, #tpu.memory_space<vmem>>, %arg12: memref<64x32xbf16, #tpu.memory_space<vmem>>, %arg13: memref<1x32xf32, #tpu.memory_space<vmem>>, %arg14: memref<16x32xf32, #tpu.memory_space<vmem>>) attributes {dimension_semantics = [#tpu.dimension_semantics<arbitrary>], iteration_bounds = array<i64: 1>, scalar_prefetch = 0 : i64, scratch_operands = 0 : i64, tpu.core_type = #tpu.core_type<tc>, window_params = [{pipeline_mode = #tpu.pipeline_mode<synchronous>, transform_indices = @transform_0, window_bounds = array<i64: 16, 32>}, {pipeline_mode = #tpu.pipeline_mode<synchronous>, transform_indices = @transform_1, window_bounds = array<i64: 16, 16>}, {pipeline_mode = #tpu.pipeline_mode<synchronous>, transform_indices = @transform_2, window_bounds = array<i64: 1, 32>}, {pipeline_mode = #tpu.pipeline_mode<synchronous>, transform_indices = @transform_3, window_bounds = array<i64: 1, 32>}, {pipeline_mode = #tpu.pipeline_mode<synchronous>, transform_indices = @transform_4, window_bounds = array<i64: 32, 192>}, {pipeline_mode = #tpu.pipeline_mode<synchronous>, transform_indices = @transform_5, window_bounds = array<i64: 64, 32>}, {pipeline_mode = #tpu.pipeline_mode<synchronous>, transform_indices = @transform_6, window_bounds = array<i64: 1, 32>}, {pipeline_mode = #tpu.pipeline_mode<synchronous>, transform_indices = @transform_7, window_bounds = array<i64: 1, 32>}, {pipeline_mode = #tpu.pipeline_mode<synchronous>, transform_indices = @transform_8, window_bounds = array<i64: 1, 32>}, {pipeline_mode = #tpu.pipeline_mode<synchronous>, transform_indices = @transform_9, window_bounds = array<i64: 32, 64>}, {pipeline_mode = #tpu.pipeline_mode<synchronous>, transform_indices = @transform_10, window_bounds = array<i64: 1, 64>}, {pipeline_mode = #tpu.pipeline_mode<synchronous>, transform_indices = @transform_11, window_bounds = array<i64: 64, 32>}, {pipeline_mode = #tpu.pipeline_mode<synchronous>, transform_indices = @transform_12, window_bounds = array<i64: 1, 32>}, {pipeline_mode = #tpu.pipeline_mode<synchronous>, transform_indices = @transform_13, window_bounds = array<i64: 16, 32>}]} {
    %c0 = arith.constant 0 : index
    %c0_0 = arith.constant 0 : index
    %0 = vector.load %arg1[%c0, %c0_0] : memref<16x32xf32, #tpu.memory_space<vmem>>, vector<16x32xf32>
    %c0_1 = arith.constant 0 : index
    %c0_2 = arith.constant 0 : index
    %1 = vector.load %arg3[%c0_1, %c0_2] : memref<1x32xf32, #tpu.memory_space<vmem>>, vector<1x32xf32>
    %c0_3 = arith.constant 0 : index
    %c0_4 = arith.constant 0 : index
    %2 = vector.load %arg4[%c0_3, %c0_4] : memref<1x32xf32, #tpu.memory_space<vmem>>, vector<1x32xf32>
    %cst = arith.constant dense<0.000000e+00> : vector<16xf32>
    %3 = vector.multi_reduction <add>, %0, %cst [1] : vector<16x32xf32> to vector<16xf32>
    %4 = vector.shape_cast %3 : vector<16xf32> to vector<16x1xf32>
    %cst_5 = arith.constant 3.200000e+01 : f32
    %5 = vector.broadcast %cst_5 : f32 to vector<16x1xf32>
    %6 = arith.divf %4, %5 : vector<16x1xf32>
    %7 = vector.broadcast %6 : vector<16x1xf32> to vector<16x32xf32>
    %8 = arith.subf %0, %7 : vector<16x32xf32>
    %9 = arith.mulf %8, %8 : vector<16x32xf32>
    %cst_6 = arith.constant dense<0.000000e+00> : vector<16xf32>
    %10 = vector.multi_reduction <add>, %9, %cst_6 [1] : vector<16x32xf32> to vector<16xf32>
    %11 = vector.shape_cast %10 : vector<16xf32> to vector<16x1xf32>
    %cst_7 = arith.constant 3.200000e+01 : f32
    %12 = vector.broadcast %cst_7 : f32 to vector<16x1xf32>
    %13 = arith.divf %11, %12 : vector<16x1xf32>
    %14 = vector.broadcast %6 : vector<16x1xf32> to vector<16x32xf32>
    %15 = arith.subf %0, %14 : vector<16x32xf32>
    %cst_8 = arith.constant 9.99999974E-6 : f32
    %16 = vector.broadcast %cst_8 : f32 to vector<16x1xf32>
    %17 = arith.addf %13, %16 : vector<16x1xf32>
    %18 = math.rsqrt %17 : vector<16x1xf32>
    %19 = vector.broadcast %18 : vector<16x1xf32> to vector<16x32xf32>
    %20 = arith.mulf %15, %19 : vector<16x32xf32>
    %21 = vector.broadcast %1 : vector<1x32xf32> to vector<16x32xf32>
    %22 = arith.mulf %20, %21 : vector<16x32xf32>
    %23 = vector.broadcast %2 : vector<1x32xf32> to vector<16x32xf32>
    %24 = arith.addf %22, %23 : vector<16x32xf32>
    %25 = arith.truncf %24 : vector<16x32xf32> to vector<16x32xbf16>
    %c0_9 = arith.constant 0 : index
    %c0_10 = arith.constant 0 : index
    %26 = vector.load %arg5[%c0_9, %c0_10] : memref<32x192xbf16, #tpu.memory_space<vmem>>, vector<32x192xbf16>
    %cst_11 = arith.constant dense<0.000000e+00> : vector<16x192xf32>
    %27 = tpu.matmul %25, %26, %cst_11 {dimension_numbers = #tpu.dot_dimension_numbers<[1], [0], [0], [1], [0, 0, 1, 1], [], []>} : vector<16x32xbf16>, vector<32x192xbf16>, vector<16x192xf32> -> vector<16x192xf32>
    %c0_12 = arith.constant 0 : index
    %c0_13 = arith.constant 0 : index
    %28 = vector.load %arg2[%c0_12, %c0_13] : memref<16x16xf32, #tpu.memory_space<vmem>>, vector<16x16xf32>
    %cst_14 = arith.constant 0.000000e+00 : f32
    %29 = vector.broadcast %cst_14 : f32 to vector<16x32xf32>
    %30 = vector.extract_strided_slice %27 {offsets = [0, 0], sizes = [16, 32], strides = [1, 1]} : vector<16x192xf32> to vector<16x32xf32>
    %31 = arith.truncf %30 : vector<16x32xf32> to vector<16x32xbf16>
    %32 = vector.extract_strided_slice %27 {offsets = [0, 64], sizes = [16, 32], strides = [1, 1]} : vector<16x192xf32> to vector<16x32xf32>
    %33 = arith.truncf %32 : vector<16x32xf32> to vector<16x32xbf16>
    %34 = vector.extract_strided_slice %27 {offsets = [0, 128], sizes = [16, 32], strides = [1, 1]} : vector<16x192xf32> to vector<16x32xf32>
    %35 = arith.truncf %34 : vector<16x32xf32> to vector<16x32xbf16>
    %cst_15 = arith.constant dense<0.000000e+00> : vector<16x16xf32>
    %36 = tpu.matmul %31, %33, %cst_15 {dimension_numbers = #tpu.dot_dimension_numbers<[1], [1], [0], [0], [0, 0, 1, 0], [], []>} : vector<16x32xbf16>, vector<16x32xbf16>, vector<16x16xf32> -> vector<16x16xf32>
    %37 = arith.addf %36, %28 : vector<16x16xf32>
    %cst_16 = arith.constant dense<0xFF800000> : vector<16xf32>
    %38 = vector.multi_reduction <maximumf>, %37, %cst_16 [1] : vector<16x16xf32> to vector<16xf32>
    %39 = vector.shape_cast %38 : vector<16xf32> to vector<16x1xf32>
    %40 = vector.broadcast %39 : vector<16x1xf32> to vector<16x16xf32>
    %41 = arith.subf %37, %40 : vector<16x16xf32>
    %42 = math.exp %41 : vector<16x16xf32>
    %cst_17 = arith.constant dense<0.000000e+00> : vector<16xf32>
    %43 = vector.multi_reduction <add>, %42, %cst_17 [1] : vector<16x16xf32> to vector<16xf32>
    %44 = vector.shape_cast %43 : vector<16xf32> to vector<16x1xf32>
    %45 = tpu.reciprocal %44 {approx = true} : vector<16x1xf32> -> vector<16x1xf32>
    %46 = vector.broadcast %45 : vector<16x1xf32> to vector<16x16xf32>
    %47 = arith.mulf %42, %46 : vector<16x16xf32>
    %48 = arith.truncf %47 : vector<16x16xf32> to vector<16x16xbf16>
    %cst_18 = arith.constant dense<0.000000e+00> : vector<16x32xf32>
    %49 = tpu.matmul %48, %35, %cst_18 {dimension_numbers = #tpu.dot_dimension_numbers<[1], [0], [0], [1], [0, 0, 1, 1], [], []>} : vector<16x16xbf16>, vector<16x32xbf16>, vector<16x32xf32> -> vector<16x32xf32>
    %50 = arith.truncf %49 : vector<16x32xf32> to vector<16x32xbf16>
    %c0_19 = arith.constant 0 : index
    %c0_20 = arith.constant 0 : index
    %51 = vector.load %arg6[%c0_19, %c0_20] : memref<64x32xbf16, #tpu.memory_space<vmem>>, vector<32x32xbf16>
    %cst_21 = arith.constant dense<0.000000e+00> : vector<16x32xf32>
    %52 = tpu.matmul %50, %51, %cst_21 {dimension_numbers = #tpu.dot_dimension_numbers<[1], [0], [0], [1], [0, 0, 1, 1], [], []>} : vector<16x32xbf16>, vector<32x32xbf16>, vector<16x32xf32> -> vector<16x32xf32>
    %53 = arith.addf %29, %52 : vector<16x32xf32>
    %54 = vector.extract_strided_slice %27 {offsets = [0, 32], sizes = [16, 32], strides = [1, 1]} : vector<16x192xf32> to vector<16x32xf32>
    %55 = arith.truncf %54 : vector<16x32xf32> to vector<16x32xbf16>
    %56 = vector.extract_strided_slice %27 {offsets = [0, 96], sizes = [16, 32], strides = [1, 1]} : vector<16x192xf32> to vector<16x32xf32>
    %57 = arith.truncf %56 : vector<16x32xf32> to vector<16x32xbf16>
    %58 = vector.extract_strided_slice %27 {offsets = [0, 160], sizes = [16, 32], strides = [1, 1]} : vector<16x192xf32> to vector<16x32xf32>
    %59 = arith.truncf %58 : vector<16x32xf32> to vector<16x32xbf16>
    %cst_22 = arith.constant dense<0.000000e+00> : vector<16x16xf32>
    %60 = tpu.matmul %55, %57, %cst_22 {dimension_numbers = #tpu.dot_dimension_numbers<[1], [1], [0], [0], [0, 0, 1, 0], [], []>} : vector<16x32xbf16>, vector<16x32xbf16>, vector<16x16xf32> -> vector<16x16xf32>
    %61 = arith.addf %60, %28 : vector<16x16xf32>
    %cst_23 = arith.constant dense<0xFF800000> : vector<16xf32>
    %62 = vector.multi_reduction <maximumf>, %61, %cst_23 [1] : vector<16x16xf32> to vector<16xf32>
    %63 = vector.shape_cast %62 : vector<16xf32> to vector<16x1xf32>
    %64 = vector.broadcast %63 : vector<16x1xf32> to vector<16x16xf32>
    %65 = arith.subf %61, %64 : vector<16x16xf32>
    %66 = math.exp %65 : vector<16x16xf32>
    %cst_24 = arith.constant dense<0.000000e+00> : vector<16xf32>
    %67 = vector.multi_reduction <add>, %66, %cst_24 [1] : vector<16x16xf32> to vector<16xf32>
    %68 = vector.shape_cast %67 : vector<16xf32> to vector<16x1xf32>
    %69 = tpu.reciprocal %68 {approx = true} : vector<16x1xf32> -> vector<16x1xf32>
    %70 = vector.broadcast %69 : vector<16x1xf32> to vector<16x16xf32>
    %71 = arith.mulf %66, %70 : vector<16x16xf32>
    %72 = arith.truncf %71 : vector<16x16xf32> to vector<16x16xbf16>
    %cst_25 = arith.constant dense<0.000000e+00> : vector<16x32xf32>
    %73 = tpu.matmul %72, %59, %cst_25 {dimension_numbers = #tpu.dot_dimension_numbers<[1], [0], [0], [1], [0, 0, 1, 1], [], []>} : vector<16x16xbf16>, vector<16x32xbf16>, vector<16x32xf32> -> vector<16x32xf32>
    %74 = arith.truncf %73 : vector<16x32xf32> to vector<16x32xbf16>
    %c32 = arith.constant 32 : index
    %c0_26 = arith.constant 0 : index
    %75 = vector.load %arg6[%c32, %c0_26] : memref<64x32xbf16, #tpu.memory_space<vmem>>, vector<32x32xbf16>
    %cst_27 = arith.constant dense<0.000000e+00> : vector<16x32xf32>
    %76 = tpu.matmul %74, %75, %cst_27 {dimension_numbers = #tpu.dot_dimension_numbers<[1], [0], [0], [1], [0, 0, 1, 1], [], []>} : vector<16x32xbf16>, vector<32x32xbf16>, vector<16x32xf32> -> vector<16x32xf32>
    %77 = arith.addf %53, %76 : vector<16x32xf32>
    %c0_28 = arith.constant 0 : index
    %c0_29 = arith.constant 0 : index
    %78 = vector.load %arg7[%c0_28, %c0_29] : memref<1x32xf32, #tpu.memory_space<vmem>>, vector<1x32xf32>
    %79 = vector.broadcast %78 : vector<1x32xf32> to vector<16x32xf32>
    %80 = arith.addf %77, %79 : vector<16x32xf32>
    %81 = arith.addf %80, %0 : vector<16x32xf32>
    %c0_30 = arith.constant 0 : index
    %c0_31 = arith.constant 0 : index
    %82 = vector.load %arg8[%c0_30, %c0_31] : memref<1x32xf32, #tpu.memory_space<vmem>>, vector<1x32xf32>
    %c0_32 = arith.constant 0 : index
    %c0_33 = arith.constant 0 : index
    %83 = vector.load %arg9[%c0_32, %c0_33] : memref<1x32xf32, #tpu.memory_space<vmem>>, vector<1x32xf32>
    %cst_34 = arith.constant dense<0.000000e+00> : vector<16xf32>
    %84 = vector.multi_reduction <add>, %81, %cst_34 [1] : vector<16x32xf32> to vector<16xf32>
    %85 = vector.shape_cast %84 : vector<16xf32> to vector<16x1xf32>
    %cst_35 = arith.constant 3.200000e+01 : f32
    %86 = vector.broadcast %cst_35 : f32 to vector<16x1xf32>
    %87 = arith.divf %85, %86 : vector<16x1xf32>
    %88 = vector.broadcast %87 : vector<16x1xf32> to vector<16x32xf32>
    %89 = arith.subf %81, %88 : vector<16x32xf32>
    %90 = arith.mulf %89, %89 : vector<16x32xf32>
    %cst_36 = arith.constant dense<0.000000e+00> : vector<16xf32>
    %91 = vector.multi_reduction <add>, %90, %cst_36 [1] : vector<16x32xf32> to vector<16xf32>
    %92 = vector.shape_cast %91 : vector<16xf32> to vector<16x1xf32>
    %cst_37 = arith.constant 3.200000e+01 : f32
    %93 = vector.broadcast %cst_37 : f32 to vector<16x1xf32>
    %94 = arith.divf %92, %93 : vector<16x1xf32>
    %95 = vector.broadcast %87 : vector<16x1xf32> to vector<16x32xf32>
    %96 = arith.subf %81, %95 : vector<16x32xf32>
    %cst_38 = arith.constant 9.99999974E-6 : f32
    %97 = vector.broadcast %cst_38 : f32 to vector<16x1xf32>
    %98 = arith.addf %94, %97 : vector<16x1xf32>
    %99 = math.rsqrt %98 : vector<16x1xf32>
    %100 = vector.broadcast %99 : vector<16x1xf32> to vector<16x32xf32>
    %101 = arith.mulf %96, %100 : vector<16x32xf32>
    %102 = vector.broadcast %82 : vector<1x32xf32> to vector<16x32xf32>
    %103 = arith.mulf %101, %102 : vector<16x32xf32>
    %104 = vector.broadcast %83 : vector<1x32xf32> to vector<16x32xf32>
    %105 = arith.addf %103, %104 : vector<16x32xf32>
    %106 = arith.truncf %105 : vector<16x32xf32> to vector<16x32xbf16>
    %c0_39 = arith.constant 0 : index
    %c0_40 = arith.constant 0 : index
    %107 = vector.load %arg10[%c0_39, %c0_40] : memref<32x64xbf16, #tpu.memory_space<vmem>>, vector<32x64xbf16>
    %cst_41 = arith.constant dense<0.000000e+00> : vector<16x64xf32>
    %108 = tpu.matmul %106, %107, %cst_41 {dimension_numbers = #tpu.dot_dimension_numbers<[1], [0], [0], [1], [0, 0, 1, 1], [], []>} : vector<16x32xbf16>, vector<32x64xbf16>, vector<16x64xf32> -> vector<16x64xf32>
    %c0_42 = arith.constant 0 : index
    %c0_43 = arith.constant 0 : index
    %109 = vector.load %arg11[%c0_42, %c0_43] : memref<1x64xf32, #tpu.memory_space<vmem>>, vector<1x64xf32>
    %110 = vector.broadcast %109 : vector<1x64xf32> to vector<16x64xf32>
    %111 = arith.addf %108, %110 : vector<16x64xf32>
    %cst_44 = arith.constant 0.000000e+00 : f32
    %112 = vector.broadcast %cst_44 : f32 to vector<16x64xf32>
    %113 = arith.maximumf %111, %112 : vector<16x64xf32>
    %114 = arith.truncf %113 : vector<16x64xf32> to vector<16x64xbf16>
    %c0_45 = arith.constant 0 : index
    %c0_46 = arith.constant 0 : index
    %115 = vector.load %arg12[%c0_45, %c0_46] : memref<64x32xbf16, #tpu.memory_space<vmem>>, vector<64x32xbf16>
    %cst_47 = arith.constant dense<0.000000e+00> : vector<16x32xf32>
    %116 = tpu.matmul %114, %115, %cst_47 {dimension_numbers = #tpu.dot_dimension_numbers<[1], [0], [0], [1], [0, 0, 1, 1], [], []>} : vector<16x64xbf16>, vector<64x32xbf16>, vector<16x32xf32> -> vector<16x32xf32>
    %c0_48 = arith.constant 0 : index
    %c0_49 = arith.constant 0 : index
    %117 = vector.load %arg13[%c0_48, %c0_49] : memref<1x32xf32, #tpu.memory_space<vmem>>, vector<1x32xf32>
    %118 = vector.broadcast %117 : vector<1x32xf32> to vector<16x32xf32>
    %119 = arith.addf %116, %118 : vector<16x32xf32>
    %120 = arith.addf %119, %81 : vector<16x32xf32>
    %c0_50 = arith.constant 0 : index
    %c0_51 = arith.constant 0 : index
    %121 = vector.load %arg14[%c0_50, %c0_51] : memref<16x32xf32, #tpu.memory_space<vmem>>, vector<16x32xf32>
    tpu.vector_store %arg14[%c0_50, %c0_51], %120 {strides = array<i32>} : memref<16x32xf32, #tpu.memory_space<vmem>>, vector<16x32xf32>,
    return
  }
  func.func @transform_0(%arg0: i32) -> (i32, i32) {
    %c0_i32 = arith.constant 0 : i32
    %c0_i32_0 = arith.constant 0 : i32
    %c0_i32_1 = arith.constant 0 : i32
    return %c0_i32, %c0_i32_0 : i32, i32
  }
  func.func @transform_1(%arg0: i32) -> (i32, i32) {
    %c0_i32 = arith.constant 0 : i32
    %c0_i32_0 = arith.constant 0 : i32
    %c0_i32_1 = arith.constant 0 : i32
    return %c0_i32, %c0_i32_0 : i32, i32
  }
  func.func @transform_2(%arg0: i32) -> (i32, i32) {
    %c0_i32 = arith.constant 0 : i32
    %c0_i32_0 = arith.constant 0 : i32
    %c0_i32_1 = arith.constant 0 : i32
    return %c0_i32, %c0_i32_0 : i32, i32
  }
  func.func @transform_3(%arg0: i32) -> (i32, i32) {
    %c0_i32 = arith.constant 0 : i32
    %c0_i32_0 = arith.constant 0 : i32
    %c0_i32_1 = arith.constant 0 : i32
    return %c0_i32, %c0_i32_0 : i32, i32
  }
  func.func @transform_4(%arg0: i32) -> (i32, i32) {
    %c0_i32 = arith.constant 0 : i32
    %c0_i32_0 = arith.constant 0 : i32
    %c0_i32_1 = arith.constant 0 : i32
    return %c0_i32, %c0_i32_0 : i32, i32
  }
  func.func @transform_5(%arg0: i32) -> (i32, i32) {
    %c0_i32 = arith.constant 0 : i32
    %c0_i32_0 = arith.constant 0 : i32
    %c0_i32_1 = arith.constant 0 : i32
    return %c0_i32, %c0_i32_0 : i32, i32
  }
  func.func @transform_6(%arg0: i32) -> (i32, i32) {
    %c0_i32 = arith.constant 0 : i32
    %c0_i32_0 = arith.constant 0 : i32
    %c0_i32_1 = arith.constant 0 : i32
    return %c0_i32, %c0_i32_0 : i32, i32
  }
  func.func @transform_7(%arg0: i32) -> (i32, i32) {
    %c0_i32 = arith.constant 0 : i32
    %c0_i32_0 = arith.constant 0 : i32
    %c0_i32_1 = arith.constant 0 : i32
    return %c0_i32, %c0_i32_0 : i32, i32
  }
  func.func @transform_8(%arg0: i32) -> (i32, i32) {
    %c0_i32 = arith.constant 0 : i32
    %c0_i32_0 = arith.constant 0 : i32
    %c0_i32_1 = arith.constant 0 : i32
    return %c0_i32, %c0_i32_0 : i32, i32
  }
  func.func @transform_9(%arg0: i32) -> (i32, i32) {
    %c0_i32 = arith.constant 0 : i32
    %c0_i32_0 = arith.constant 0 : i32
    %c0_i32_1 = arith.constant 0 : i32
    return %c0_i32, %c0_i32_0 : i32, i32
  }
  func.func @transform_10(%arg0: i32) -> (i32, i32) {
    %c0_i32 = arith.constant 0 : i32
    %c0_i32_0 = arith.constant 0 : i32
    %c0_i32_1 = arith.constant 0 : i32
    return %c0_i32, %c0_i32_0 : i32, i32
  }
  func.func @transform_11(%arg0: i32) -> (i32, i32) {
    %c0_i32 = arith.constant 0 : i32
    %c0_i32_0 = arith.constant 0 : i32
    %c0_i32_1 = arith.constant 0 : i32
    return %c0_i32, %c0_i32_0 : i32, i32
  }
  func.func @transform_12(%arg0: i32) -> (i32, i32) {
    %c0_i32 = arith.constant 0 : i32
    %c0_i32_0 = arith.constant 0 : i32
    %c0_i32_1 = arith.constant 0 : i32
    return %c0_i32, %c0_i32_0 : i32, i32
  }
  func.func @transform_13(%arg0: i32) -> (i32, i32) {
    %c0_i32 = arith.constant 0 : i32
    %c0_i32_0 = arith.constant 0 : i32
    %c0_i32_1 = arith.constant 0 : i32
    return %c0_i32, %c0_i32_0 : i32, i32
  }
}

</mosaic_0001>

<bundles_post_ra>
// kernel: tpu_custom_call.1
= control target key start
LH: loop header
LB: loop body
LE: loop exit
PB: predicated region body
PF: predicated region fallthrough
CT: control target
= control target key end

     0   :  { %vm50_vm0 = vcmask 261120   ;;  %s1196_s0 = inlined_call_operand.vmem [shape: f32[16,32], index: 0, kind: input, shape index: {}]   ;;  %s1197_s1 = inlined_call_operand.vmem [shape: f32[16,16], index: 1, kind: input, shape index: {}]   ;;  %s1198_s2 = inlined_call_operand.vmem [shape: f32[1,32], index: 2, kind: input, shape index: {}]   ;;  %s1199_s3 = inlined_call_operand.vmem [shape: f32[1,32], index: 3, kind: input, shape index: {}]   ;;  %s1200_s4 = inlined_call_operand.vmem [shape: bf16[32,192], index: 4, kind: input, shape index: {}]   ;;  %s1201_s5 = inlined_call_operand.vmem [shape: bf16[64,32], index: 5, kind: input, shape index: {}]   ;;  %s1202_s6 = inlined_call_operand.vmem [shape: f32[1,32], index: 6, kind: input, shape index: {}]   ;;  %s1203_s7 = inlined_call_operand.vmem [shape: f32[1,32], index: 7, kind: input, shape index: {}]   ;;  %s1204_s8 = inlined_call_operand.vmem [shape: f32[1,32], index: 8, kind: input, shape index: {}]   ;;  %s1205_s9 = inlined_call_operand.vmem [shape: bf16[32,64], index: 9, kind: input, shape index: {}]   ;;  %s1206_s10 = inlined_call_operand.vmem [shape: f32[1,64], index: 10, kind: input, shape index: {}]   ;;  %s1207_s11 = inlined_call_operand.vmem [shape: bf16[64,32], index: 11, kind: input, shape index: {}]   ;;  %s1208_s12 = inlined_call_operand.vmem [shape: f32[1,32], index: 12, kind: input, shape index: {}]   ;;  %s1209_s13 = inlined_call_operand.hbm [shape: f32[16,32], index: 13, kind: output, shape index: {}]  }
   0x1   :  { %v1028_v0 = vld [vmem:[%s1196_s0] sm:$0xff]  ;;  %v1033_v1 = vld [vmem:[%s1196_s0 + $0x8] sm:$0xff] }
   0x2   :  { %v51_v2 = vsel %vm50_vm0, %v1028_v0, 0.0  ;;  %v54_v3 = vsel %vm50_vm0, %v1033_v1, 0.0 }
   0x3   :  { %52 = vadd.xlane.f32.xlu0 %v51_v2 }
   0x7   :  { %55 = vadd.xlane.f32.xlu0 %v54_v3 }
   0x8   :  { %18 = vsyncpa [#allocation3], 0  ;;  %v882_v14 = vld [vmem:[%s1200_s4 + $0x4] ss:$8 sps:$4 sm:$0xff]   ;;  %v884_v15 = vld [vmem:[%s1200_s4] ss:$8 sps:$4 sm:$0xff]  }
   0x9   :  { %122 = vmatprep.subr.bf16.mxu1 %v882_v14  ;;  %v885_v16 = vld [vmem:[%s1200_s4 + $0x14] ss:$8 sps:$4 sm:$0xff]   ;;  %v887_v17 = vld [vmem:[%s1200_s4 + $0x10] ss:$8 sps:$4 sm:$0xff]   ;;  %v946_v18 = vmov 0   ;;  %v947_v36 = vmov 0.0  }
   0xa   :  { %123 = vmatpush1.bf16.msra.mxu1 %v884_v15  ;;  %154 = vmatprep.mubr.bf16.mxu1 %v946_v18  ;;  %v761_v27 = vld [vmem:[%s1198_s2] ss:$0 sm:$0xff]  ;;  %vm948_vm1 = vmmov 0   ;;  %s949_s2 = smov 32   ;;  %s951_s22 = smov 96   ;;  %v166_v50 = vld [vmem:[%s1197_s1 + $0x8] sm:$0xff] }
   0xb   :  { %124 = vmatprep.subr.bf16.mxu1 %v885_v16  ;;  %v762_v31 = vld [vmem:[%s1199_s3] ss:$0 sm:$0xff]  ;;  %819 = vmatprep.subr.bf16.mxu0 %v947_v36  ;;  %s950_s3 = smov 64   ;;  %vm219_vm2 = vcmask 130048   ;;  %vm696_vm3 = vcmask 523264  }
   0xc   :  { %821 = vmatprep.mubr.msk.bf16.mxu0 %vm948_vm1, %v947_v36  ;;  %v165_v48 = vld [vmem:[%s1197_s1] sm:$0xff] }
   0xe   :  { %125 = vmatpush1.bf16.msra.mxu1 %v887_v17 }
   0xf   :  { %813 = vmatprep.subr.bf16.mxu1 %v947_v36 }
  0x90   :  { %v53_v4 = vpop.xlane.xlu0 %52 }
  0x91   :  { %v58_v5 = vmul.f32 0.03125, %v53_v4 }
  0x93   :  { %v60_v6 = vsub.f32 %v1028_v0, %v58_v5 }
  0x94   :  { %v56_v7 = vpop.xlane.xlu0 %55 }
  0x95   :  { %v59_v8 = vmul.f32 0.03125, %v56_v7  ;;  %v62_v9 = vmul.f32 %v60_v6, %v60_v6 }
  0x97   :  { %v61_v10 = vsub.f32 %v1033_v1, %v59_v8  ;;  %v64_v11 = vsel %vm50_vm0, %v62_v9, 0.0 }
  0x98   :  { %65 = vadd.xlane.f32.xlu1 %v64_v11 }
  0x99   :  { %v63_v12 = vmul.f32 %v61_v10, %v61_v10 }
  0x9b   :  { %v67_v13 = vsel %vm50_vm0, %v63_v12, 0.0 }
  0x9c   :  { %68 = vadd.xlane.f32.xlu1 %v67_v13 }
 0x125   :  { %v66_v19 = vpop.xlane.xlu1 %65 }
 0x126   :  { %v70_v20 = vmul.f32 0.03125, %v66_v19 }
 0x128   :  { %v72_v21 = vadd.f32 1e-05, %v70_v20 }
 0x129   :  { %v69_v22 = vpop.xlane.xlu1 %68 }
 0x12a   :  { %898 = vrsqrt.f32 %v72_v21  ;;  %v71_v23 = vmul.f32 0.03125, %v69_v22 }
 0x12c   :  { %v73_v24 = vadd.f32 1e-05, %v71_v23 }
 0x12e   :  { %900 = vrsqrt.f32 %v73_v24 }
 0x134   :  { %v899_v25 = vpop.eup %898 }
 0x135   :  { %v76_v26 = vmul.f32 %v899_v25, %v60_v6 }
 0x137   :  { %v84_v30 = vmul.f32 %v761_v27, %v76_v26 }
 0x138   :  { %v901_v28 = vpop.eup %900 }
 0x139   :  { %v77_v29 = vmul.f32 %v901_v28, %v61_v10  ;;  %v92_v33 = vadd.f32 %v762_v31, %v84_v30 }
 0x13b   :  { %v85_v32 = vmul.f32 %v761_v27, %v77_v29 }
 0x13d   :  { %v93_v34 = vadd.f32 %v762_v31, %v85_v32 }
 0x13f   :  { %v94_v35 = vpack.c.bf16 %v93_v34, %v92_v33 }
 0x141   :  { %767 = vmatmul.mubr.msk.bf16.vlgmr.msra.gmra.mrb[0].mxu1 %vm50_vm0, %v94_v35 }
 0x142   :  { %815 = vmatprep.mubr.msk.bf16.mxu1 %vm948_vm1, %v947_v36 }
 0x214   :  { %v156_v37 = vpop.f32.mrb[0].mxu1 }
 0x215   :  { %v158_v38 = vpop.f32.mrb[1].mxu1 }
 0x216   :  { %v160_v39 = vpop.f32.mrb[2].mxu1 }
 0x217   :  { %v167_v40 = vpack.c.bf16 %v160_v39, %v156_v37  ;;  %v162_v41 = vpop.f32.mrb[3].mxu1  ;;  %v888_v39 = vld [vmem:[%s1201_s5] sm:$0xff]  }
 0x218   :  { %v1068_v42 = vpack.c.bf16 %v162_v41, %v158_v38  ;;  %v889_v41 = vld [vmem:[%s1201_s5 + $0x8] sm:$0xff]  }
 0x219   :  { %294 = vrot.lane.b32.xlu1 %v167_v40, %s949_s2  ;;  %170 = vrot.lane.b32.xlu0 %v167_v40, %s950_s3 }
 0x21a   :  { %820 = vmatpush3.bf16.msra.mxu0 %v1068_v42 }
 0x21b   :  { %831 = vmatprep.subr.bf16.mxu0 %v947_v36 }
 0x21d   :  { %292 = vrot.lane.b32.xlu1 %v167_v40, %s951_s22 }
 0x28b   :  { %v171_v43 = vpop.permute.xlu0 %170  ;;  %v295_v45 = vpop.permute.xlu1 %294 }
 0x28c   :  { %v176_v44 = vsel %vm50_vm0, %v171_v43, 0  ;;  %v300_v46 = vsel %vm50_vm0, %v295_v45, 0  ;;  %v891_v43 = vld [vmem:[%s1201_s5 + $0x18] sm:$0xff]  }
 0x28d   :  { %814 = vmatpush3.bf16.xpose.msra.mxu1 %v176_v44 }
 0x28e   :  { %825 = vmatprep.subr.bf16.mxu1 %v947_v36 }
 0x28f   :  { %v293_v47 = vpop.permute.xlu1 %292 }
 0x294   :  { %816 = vmatmul.mubr.msk.bf16.vlgmr.msra.gmra.mrb[4].mxu1 %vm50_vm0, %v167_v40 }
 0x295   :  { %826 = vmatpush3.bf16.xpose.msra.mxu1 %v300_v46  ;;  %827 = vmatprep.mubr.msk.bf16.mxu1 %vm948_vm1, %v947_v36 }
 0x296   :  { %837 = vmatprep.subr.bf16.mxu1 %v947_v36 }
 0x29c   :  { %828 = vmatmul.mubr.msk.bf16.vlgmr.msra.gmra.mrb[8].mxu1 %vm50_vm0, %v293_v47 }
 0x29d   :  { %841 = vmatprep.mubr.msk.bf16.mxu1 %vm948_vm1, %v947_v36 }
 0x367   :  { %v212_v49 = vpop.f32.mrb[4].mxu1 }
 0x368   :  { %v213_v51 = vadd.f32 %v212_v49, %v165_v48  ;;  %v817_v52 = vpop.f32.mrb[5].mxu1 }
 0x369   :  { %v215_v53 = vpop.f32.mrb[6].mxu1 }
 0x36a   :  { %v216_v54 = vadd.f32 %v215_v53, %v166_v50  ;;  %v818_v55 = vpop.f32.mrb[7].mxu1  ;;  %v220_v56 = vsel %vm219_vm2, %v213_v51, -inf }
 0x36b   :  { %221 = vmax.xlane.f32.xlu1 %v220_v56 }
 0x36c   :  { %v223_v57 = vsel %vm219_vm2, %v216_v54, -inf }
 0x36d   :  { %224 = vmax.xlane.f32.xlu0 %v223_v57 }
 0x36f   :  { %v336_v58 = vpop.f32.mrb[8].mxu1 }
 0x370   :  { %v337_v59 = vadd.f32 %v336_v58, %v165_v48  ;;  %v829_v60 = vpop.f32.mrb[9].mxu1 }
 0x371   :  { %v339_v61 = vpop.f32.mrb[10].mxu1 }
 0x372   :  { %v340_v62 = vadd.f32 %v339_v61, %v166_v50  ;;  %v830_v63 = vpop.f32.mrb[11].mxu1  ;;  %v343_v2 = vsel %vm219_vm2, %v337_v59, -inf }
 0x373   :  { %344 = vmax.xlane.f32.xlu0 %v343_v2 }
 0x374   :  { %v346_v3 = vsel %vm219_vm2, %v340_v62, -inf }
 0x377   :  { %347 = vmax.xlane.f32.xlu0 %v346_v3 }
 0x3f8   :  { %v222_v4 = vpop.xlane.xlu1 %221 }
 0x3f9   :  { %v226_v5 = vsub.f32 %v213_v51, %v222_v4 }
 0x3fa   :  { %v225_v6 = vpop.xlane.xlu0 %224 }
 0x3fb   :  { %v228_v7 = vmul.f32 1.442695, %v226_v5  ;;  %v227_v8 = vsub.f32 %v216_v54, %v225_v6 }
 0x3fd   :  { %902 = vpow2.f32 %v228_v7  ;;  %v230_v9 = vmul.f32 1.442695, %v227_v8 }
 0x3ff   :  { %904 = vpow2.f32 %v230_v9 }
 0x400   :  { %v345_v10 = vpop.xlane.xlu0 %344 }
 0x401   :  { %v349_v11 = vsub.f32 %v337_v59, %v345_v10  ;;  %v778_v59 = vld [vmem:[%s1202_s6] ss:$0 sm:$0xff] }
 0x403   :  { %v351_v12 = vmul.f32 1.442695, %v349_v11 }
 0x404   :  { %v348_v13 = vpop.xlane.xlu0 %347 }
 0x405   :  { %906 = vpow2.f32 %v351_v12  ;;  %v350_v14 = vsub.f32 %v340_v62, %v348_v13 }
 0x407   :  { %v903_v15 = vpop.eup %902  ;;  %v353_v16 = vmul.f32 1.442695, %v350_v14 }
 0x408   :  { %v232_v17 = vsel %vm219_vm2, %v903_v15, 0.0 }
 0x409   :  { %v905_v18 = vpop.eup %904  ;;  %908 = vpow2.f32 %v353_v16  ;;  %233 = vadd.xlane.f32.xlu1 %v232_v17  ;;  %v892_v17 = vld [vmem:[%s1205_s9] sm:$0xff]  }
 0x40a   :  { %v235_v19 = vsel %vm219_vm2, %v905_v18, 0.0 }
 0x40b   :  { %236 = vadd.xlane.f32.xlu0 %v235_v19  ;;  %v894_v19 = vld [vmem:[%s1207_s11] sm:$0xff]  }
 0x40f   :  { %v907_v20 = vpop.eup %906 }
 0x410   :  { %v355_v21 = vsel %vm219_vm2, %v907_v20, 0.0 }
 0x411   :  { %356 = vadd.xlane.f32.xlu1 %v355_v21 }
 0x413   :  { %v909_v22 = vpop.eup %908 }
 0x414   :  { %v358_v23 = vsel %vm219_vm2, %v909_v22, 0.0 }
 0x415   :  { %359 = vadd.xlane.f32.xlu0 %v358_v23 }
 0x422   :  { %367 = vrot.lane.b32.xlu1 %v1068_v42, %s951_s22  ;;  %v890_v42 = vld [vmem:[%s1201_s5 + $0x10] sm:$0xff]  }
 0x423   :  { %838 = vmatpush3.bf16.msra.mxu1 %v890_v42 }
 0x424   :  { %839 = vmatprep.subr.bf16.mxu1 %v947_v36 }
 0x427   :  { %840 = vmatpush3.bf16.msra.mxu1 %v891_v43 }
 0x428   :  { %853 = vmatprep.subr.bf16.mxu1 %v947_v36 }
 0x496   :  { %v234_v24 = vpop.xlane.xlu1 %233 }
 0x497   :  { %910 = vrcp.f32 %v234_v24 }
 0x498   :  { %v237_v25 = vpop.xlane.xlu0 %236 }
 0x499   :  { %912 = vrcp.f32 %v237_v25 }
 0x49e   :  { %v357_v26 = vpop.xlane.xlu1 %356 }
 0x49f   :  { %914 = vrcp.f32 %v357_v26 }
 0x4a1   :  { %v911_v27 = vpop.eup %910 }
 0x4a2   :  { %v360_v28 = vpop.xlane.xlu0 %359  ;;  %v240_v30 = vmul.f32 %v911_v27, %v903_v15  ;;  %v368_v33 = vpop.permute.xlu1 %367 }
 0x4a3   :  { %v913_v29 = vpop.eup %912  ;;  %916 = vrcp.f32 %v360_v28 }
 0x4a4   :  { %v241_v31 = vmul.f32 %v913_v29, %v905_v18  ;;  %v893_v18 = vld [vmem:[%s1205_s9 + $0x8] sm:$0xff]   ;;  %v779_v29 = vld [vmem:[%s1203_s7] ss:$0 sm:$0xff] }
 0x4a6   :  { %v242_v32 = vpack.c.bf16 %v241_v31, %v240_v30 }
 0x4a8   :  { %822 = vmatmul.mubr.msk.bf16.vlgmr.msra.gmra.mrb[0].mxu0 %vm219_vm2, %v242_v32 }
 0x4a9   :  { %832 = vmatpush3.bf16.msra.mxu0 %v368_v33  ;;  %833 = vmatprep.mubr.msk.bf16.mxu0 %vm948_vm1, %v947_v36  ;;  %v915_v34 = vpop.eup %914  ;;  %v780_v33 = vld [vmem:[%s1204_s8] ss:$0 sm:$0xff] }
 0x4aa   :  { %845 = vmatprep.subr.bf16.mxu0 %v947_v36  ;;  %v363_v37 = vmul.f32 %v915_v34, %v907_v20  ;;  %v895_v20 = vld [vmem:[%s1207_s11 + $0x8] sm:$0xff]  }
 0x4ad   :  { %v917_v35 = vpop.eup %916 }
 0x4ae   :  { %v364_v38 = vmul.f32 %v917_v35, %v909_v22 }
 0x4b0   :  { %v365_v40 = vpack.c.bf16 %v364_v38, %v363_v37 }
 0x4b2   :  { %834 = vmatmul.mubr.msk.bf16.vlgmr.msra.gmra.mrb[4].mxu0 %vm219_vm2, %v365_v40  ;;  %v897_v40 = vld [vmem:[%s1207_s11 + $0x18] sm:$0xff]  }
 0x4b3   :  { %846 = vmatpush3.bf16.msra.mxu0 %v888_v39  ;;  %849 = vmatprep.mubr.msk.bf16.mxu0 %vm948_vm1, %v947_v36  ;;  %v896_v39 = vld [vmem:[%s1207_s11 + $0x10] sm:$0xff]  }
 0x4b4   :  { %847 = vmatprep.subr.bf16.mxu0 %v947_v36 }
 0x4b7   :  { %848 = vmatpush3.bf16.msra.mxu0 %v889_v41  ;;  %v781_v41 = vld [vmem:[%s1206_s10] ss:$0 sm:$0xff]  ;;  %s952_s10 = smov [#allocation2]  }
 0x4b8   :  { %861 = vmatprep.subr.bf16.mxu0 %v947_v36  ;;  %s750_s11 = sshll.u32 %s952_s10, 4  ;;  %s751_s11 = int_to_ptr.vmem [resolvable:$true] %s750_s11 }
 0x4b9   :  { %s922_s0 = scalar_lea.vmem %s751_s11, 256  ;;  %p927_p1 = scmp.lt.s32.totalorder %s751_s11, %s751_s11 }
 0x4ba   :  { %p923_p0 = scmp.ne.s32.totalorder %s751_s11, %s922_s0  ;;  %p928_p2 = scmp.lt.s32.totalorder %s922_s0, %s922_s0 }
 0x4bc   :  { %p929_p3 = por %p928_p2, %p927_p1 }
 0x4be   :  { %p930_p4 = pnand %p929_p3, %p923_p0 }
 0x57b   :  { %v280_v44 = vpop.f32.mrb[0].mxu0 }
 0x57c   :  { %v823_v45 = vpop.f32.mrb[1].mxu0 }
 0x57d   :  { %v283_v46 = vpop.f32.mrb[2].mxu0 }
 0x57e   :  { %v287_v47 = vpack.c.bf16 %v283_v46, %v280_v44  ;;  %v824_v48 = vpop.f32.mrb[3].mxu0 }
 0x580   :  { %850 = vmatmul.mubr.msk.bf16.vlgmr.msra.gmra.mrb[8].mxu0 %vm50_vm0, %v287_v47 }
 0x581   :  { %869 = vmatprep.mubr.msk.bf16.mxu0 %vm948_vm1, %v947_v36  ;;  %862 = vmatpush3.bf16.msra.mxu0 %v894_v19 }
 0x582   :  { %863 = vmatprep.subr.bf16.mxu0 %v947_v36 }
 0x585   :  { %v407_v49 = vpop.f32.mrb[4].mxu0  ;;  %864 = vmatpush3.bf16.msra.mxu0 %v895_v20 }
 0x586   :  { %v835_v50 = vpop.f32.mrb[5].mxu0  ;;  %865 = vmatprep.subr.bf16.mxu0 %v947_v36 }
 0x587   :  { %v410_v51 = vpop.f32.mrb[6].mxu0 }
 0x588   :  { %v414_v52 = vpack.c.bf16 %v410_v51, %v407_v49  ;;  %v836_v53 = vpop.f32.mrb[7].mxu0 }
 0x589   :  { %866 = vmatpush3.bf16.msra.mxu0 %v896_v39 }
 0x58a   :  { %842 = vmatmul.mubr.msk.bf16.vlgmr.msra.gmra.mrb[12].mxu1 %vm50_vm0, %v414_v52  ;;  %867 = vmatprep.subr.bf16.mxu0 %v947_v36 }
 0x58b   :  { %857 = vmatprep.mubr.msk.bf16.mxu1 %vm948_vm1, %v947_v36  ;;  %854 = vmatpush3.bf16.msra.mxu1 %v892_v17 }
 0x58c   :  { %855 = vmatprep.subr.bf16.mxu1 %v947_v36  ;;  %v785_v36 = vld [vmem:[%s1208_s12] ss:$0 sm:$0xff] }
 0x58d   :  { %868 = vmatpush3.bf16.msra.mxu0 %v897_v40 }
 0x58f   :  { %856 = vmatpush3.bf16.msra.mxu1 %v893_v18 }
 0x653   :  { %v524_v54 = vpop.f32.mrb[8].mxu0 }
 0x654   :  { %v851_v55 = vpop.f32.mrb[9].mxu0 }
 0x655   :  { %v527_v56 = vpop.f32.mrb[10].mxu0 }
 0x656   :  { %v852_v57 = vpop.f32.mrb[11].mxu0 }
 0x65d   :  { %v468_v58 = vpop.f32.mrb[12].mxu1 }
 0x65e   :  { %v525_v60 = vadd.f32 %v524_v54, %v468_v58  ;;  %v843_v61 = vpop.f32.mrb[13].mxu1 }
 0x65f   :  { %v471_v62 = vpop.f32.mrb[14].mxu1 }
 0x660   :  { %v538_v63 = vadd.f32 %v778_v59, %v525_v60  ;;  %v528_v2 = vadd.f32 %v527_v56, %v471_v62  ;;  %v844_v3 = vpop.f32.mrb[15].mxu1 }
 0x662   :  { %v1132_v4 = vadd.f32 %v538_v63, %v1028_v0  ;;  %v539_v5 = vadd.f32 %v778_v59, %v528_v2 }
 0x664   :  { %v1135_v6 = vadd.f32 %v539_v5, %v1033_v1  ;;  %v544_v7 = vsel %vm50_vm0, %v1132_v4, 0.0 }
 0x665   :  { %545 = vadd.xlane.f32.xlu0 %v544_v7 }
 0x666   :  { %v547_v8 = vsel %vm50_vm0, %v1135_v6, 0.0 }
 0x669   :  { %548 = vadd.xlane.f32.xlu0 %v547_v8 }
 0x6f2   :  { %v546_v9 = vpop.xlane.xlu0 %545 }
 0x6f3   :  { %v550_v10 = vmul.f32 0.03125, %v546_v9 }
 0x6f5   :  { %v552_v11 = vsub.f32 %v1132_v4, %v550_v10 }
 0x6f6   :  { %v549_v12 = vpop.xlane.xlu0 %548 }
 0x6f7   :  { %v551_v13 = vmul.f32 0.03125, %v549_v12  ;;  %v554_v0 = vmul.f32 %v552_v11, %v552_v11 }
 0x6f9   :  { %v553_v14 = vsub.f32 %v1135_v6, %v551_v13  ;;  %v556_v1 = vsel %vm50_vm0, %v554_v0, 0.0 }
 0x6fa   :  { %557 = vadd.xlane.f32.xlu0 %v556_v1 }
 0x6fb   :  { %v555_v15 = vmul.f32 %v553_v14, %v553_v14 }
 0x6fd   :  { %v559_v16 = vsel %vm50_vm0, %v555_v15, 0.0 }
 0x6fe   :  { %560 = vadd.xlane.f32.xlu0 %v559_v16 }
 0x787   :  { %v558_v21 = vpop.xlane.xlu0 %557 }
 0x788   :  { %v562_v22 = vmul.f32 0.03125, %v558_v21 }
 0x78a   :  { %v564_v23 = vadd.f32 1e-05, %v562_v22 }
 0x78b   :  { %v561_v24 = vpop.xlane.xlu0 %560 }
 0x78c   :  { %918 = vrsqrt.f32 %v564_v23  ;;  %v563_v25 = vmul.f32 0.03125, %v561_v24 }
 0x78e   :  { %v565_v26 = vadd.f32 1e-05, %v563_v25 }
 0x790   :  { %920 = vrsqrt.f32 %v565_v26 }
 0x796   :  { %v919_v27 = vpop.eup %918 }
 0x797   :  { %v568_v28 = vmul.f32 %v919_v27, %v552_v11 }
 0x799   :  { %v576_v31 = vmul.f32 %v779_v29, %v568_v28 }
 0x79a   :  { %v921_v30 = vpop.eup %920 }
 0x79b   :  { %v569_v32 = vmul.f32 %v921_v30, %v553_v14  ;;  %v584_v35 = vadd.f32 %v780_v33, %v576_v31 }
 0x79d   :  { %v577_v34 = vmul.f32 %v779_v29, %v569_v32 }
 0x79f   :  { %v585_v37 = vadd.f32 %v780_v33, %v577_v34 }
 0x7a1   :  { %v586_v38 = vpack.c.bf16 %v585_v37, %v584_v35 }
 0x7a3   :  { %858 = vmatmul.mubr.msk.bf16.vlgmr.msra.gmra.mrb[16].mxu1 %vm50_vm0, %v586_v38 }
 0x876   :  { %v647_v42 = vpop.f32.mrb[16].mxu1 }
 0x877   :  { %v648_v43 = vadd.f32 %v781_v41, %v647_v42  ;;  %v859_v44 = vpop.f32.mrb[17].mxu1 }
 0x878   :  { %v650_v45 = vpop.f32.mrb[18].mxu1 }
 0x879   :  { %v651_v46 = vadd.f32 %v781_v41, %v650_v45  ;;  %v860_v47 = vpop.f32.mrb[19].mxu1  ;;  %v654_v48 = vmax.f32 %v648_v43, 0.0 }
 0x87b   :  { %v655_v49 = vmax.f32 %v651_v46, 0.0 }
 0x87d   :  { %v656_v50 = vpack.c.bf16 %v655_v49, %v654_v48 }
 0x87f   :  { %870 = vmatmul.mubr.msk.bf16.vlgmr.msra.gmra.mrb[12].mxu0 %vm696_vm3, %v656_v50 }
 0x952   :  { %v734_v51 = vpop.f32.mrb[12].mxu0 }
 0x953   :  { %v735_v52 = vadd.f32 %v785_v36, %v734_v51  ;;  %v871_v53 = vpop.f32.mrb[13].mxu0 }
 0x954   :  { %v737_v54 = vpop.f32.mrb[14].mxu0 }
 0x955   :  { %v741_v55 = vadd.f32 %v735_v52, %v1132_v4  ;;  %v738_v56 = vadd.f32 %v785_v36, %v737_v54  ;;  %v872_v57 = vpop.f32.mrb[15].mxu0 }
 0x957   :  { %743 = vst.msk [vmem:[#allocation2] sm:$0xff] %vm50_vm0, %v741_v55  ;;  %v742_v58 = vadd.f32 %v738_v56, %v1135_v6 }
 0x959   :  { %744 = vst.msk [vmem:[#allocation2 + $0x8] sm:$0xff] %vm50_vm0, %v742_v58 }
 0x95a   :  { %933 = shalt.err (!%p930_p4)
}
 0x95b   :  { %s934_s30 = scalar_lea.hbm %s1209_s13, 256 }
 0x95c   :  { %p935_p5 = scmp.ne.s32.totalorder %s1209_s13, %s934_s30  ;;  %p938_p6 = scmp.lt.u32.totalorder %s934_s30, %s1209_s13 }
 0x95e   :  { %p940_p7 = pnand %p938_p6, %p935_p5 }
 0x960   :  { %943 = shalt.err (!%p940_p7)
}
 0x961   :  { %s953_s6 = smov 128   ;;  %s954_s17 = smov 8  }
 0x962   :  { %756 = dma.vmem_to_hbm [thread:$0]  %s751_s11, 256, %s1209_s13, [#allocation3], %s953_s6, %s953_s6, %s954_s17  }
 0x963   :  { %944 = dma.done.wait [#allocation3], 256  }
 0x964   :  { %945 = vsyncadd [#allocation3], 4294967040 }
 0x965   :  { %760 = vsyncpa [#allocation3], 1 }

</bundles_post_ra>
